<compile_context>
chip_gen: v7x
topology: tpu7x:2x2x1
jax: 0.10.0
libtpu: 0.0.40
codegen_flags: <defaults>
</compile_context>

<pallas_src>
import jax
import jax.numpy as jnp
from jax.experimental import pallas as pl
from jax.experimental.pallas import tpu as pltpu

INPUT_SIZE = 128
HIDDEN_SIZE = 256
OUTPUT_SIZE = 10
PADDED_OUT = 128          # lane-dense padded width for the final layer
MAX_BATCH_TILE = 2048     # rows per grid step at large batch sizes


def _round_up(n, m):
    return ((n + m - 1) // m) * m


def _device_kind():
    try:
        return jax.devices()[0].device_kind.lower()
    except Exception:
        return ""


_KIND = _device_kind()
# v5e has no bf16 VPU -> keep elementwise math in f32 there.
_USE_BF16_ELEMENTWISE = "v5" not in _KIND
_EW_DTYPE = jnp.bfloat16 if _USE_BF16_ELEMENTWISE else jnp.float32


def _dense(h_bf16, w_ref, b_ref, relu):
    """One layer: bf16 MXU matmul, f32 accumulate, bias/ReLU in _EW_DTYPE."""
    acc = jnp.dot(h_bf16, w_ref[...], preferred_element_type=jnp.float32)
    y = acc.astype(_EW_DTYPE) + b_ref[...]
    if relu:
        y = jnp.maximum(y, 0)
    return y.astype(jnp.bfloat16)


def _mlp_kernel(x_ref,
                w1_ref, b1_ref,
                w2_ref, b2_ref,
                w3_ref, b3_ref,
                w4_ref, b4_ref,
                o_ref):
    """Fused 4-layer MLP on one batch tile."""
    h = x_ref[...].astype(jnp.bfloat16)           # no-op if input already bf16
    h = _dense(h, w1_ref, b1_ref, relu=True)
    h = _dense(h, w2_ref, b2_ref, relu=True)
    h = _dense(h, w3_ref, b3_ref, relu=True)
    out = _dense(h, w4_ref, b4_ref, relu=False)
    o_ref[...] = out.astype(o_ref.dtype)          # (tile, 128) lane-dense bf16 store


def _full_spec(shape):
    # Whole-array block (constant index map) -> DMA'd once, stays resident.
    return pl.BlockSpec(shape, lambda i: (0, 0))


def _dim_semantics(num_steps):
    # TODO(synk): consider core_map over an explicit 2-way batch split on v7x.
    if "v7" in _KIND and num_steps >= 2 and hasattr(pltpu, "CORE_PARALLEL"):
        return (pltpu.CORE_PARALLEL,)
    return ("parallel",)


@jax.jit
def benchmark_model_forward(x, params):
    """x: [batch, 128] (bf16 preferred, f32 accepted). params: prepared dict.
    Returns [batch, 10] bf16 logits."""
    batch = x.shape[0]

    # One big tile for small batches, 2048-row tiles otherwise.
    tile = _round_up(batch, 8) if batch <= MAX_BATCH_TILE else MAX_BATCH_TILE
    num_steps = pl.cdiv(batch, tile)   # partial last block, no padding copy
    grid = (num_steps,)

    in_specs = [
        pl.BlockSpec((tile, INPUT_SIZE), lambda i: (i, 0)),          # x tile
        _full_spec(params["w1"].shape), _full_spec(params["b1"].shape),
        _full_spec(params["w2"].shape), _full_spec(params["b2"].shape),
        _full_spec(params["w3"].shape), _full_spec(params["b3"].shape),
        _full_spec(params["w4"].shape), _full_spec(params["b4"].shape),
    ]
    out_spec = pl.BlockSpec((tile, PADDED_OUT), lambda i: (i, 0))

    flops_per_row = 2 * (INPUT_SIZE * HIDDEN_SIZE
                         + HIDDEN_SIZE * (2 * HIDDEN_SIZE)
                         + (2 * HIDDEN_SIZE) * HIDDEN_SIZE
                         + HIDDEN_SIZE * PADDED_OUT)
    param_bytes = sum(int(v.size) * v.dtype.itemsize for v in params.values())
    cost = pl.CostEstimate(
        flops=batch * flops_per_row,
        transcendentals=0,
        bytes_accessed=(x.size * x.dtype.itemsize
                        + batch * PADDED_OUT * 2
                        + param_bytes),
    )

    out = pl.pallas_call(
        _mlp_kernel,
        out_shape=jax.ShapeDtypeStruct((batch, PADDED_OUT), jnp.bfloat16),
        grid_spec=pltpu.PrefetchScalarGridSpec(
            num_scalar_prefetch=0,
            grid=grid,
            in_specs=in_specs,
            out_specs=out_spec,
        ),
        compiler_params=pltpu.CompilerParams(
            dimension_semantics=_dim_semantics(num_steps),
            vmem_limit_bytes=32 * 1024 * 1024,
        ),
        cost_estimate=cost,
    )(x,
      params["w1"], params["b1"],
      params["w2"], params["b2"],
      params["w3"], params["b3"],
      params["w4"], params["b4"])

    return out[:batch, :OUTPUT_SIZE]


def init_params(key):
    """Deterministic f32 init mimicking nn.Linear: U(-1/sqrt(fan_in), +1/sqrt(fan_in))."""
    dims = [(INPUT_SIZE, HIDDEN_SIZE),
            (HIDDEN_SIZE, HIDDEN_SIZE * 2),
            (HIDDEN_SIZE * 2, HIDDEN_SIZE),
            (HIDDEN_SIZE, OUTPUT_SIZE)]
    params = {}
    for li, (fan_in, fan_out) in enumerate(dims, start=1):
        key, kw, kb = jax.random.split(key, 3)
        bound = 1.0 / jnp.sqrt(jnp.float32(fan_in))
        params[f"w{li}"] = jax.random.uniform(
            kw, (fan_in, fan_out), jnp.float32, -bound, bound)
        params[f"b{li}"] = jax.random.uniform(
            kb, (1, fan_out), jnp.float32, -bound, bound)
    return params


def prepare_params(params_f32):
    """Cast weights to bf16, biases to the elementwise dtype, and zero-pad the
    final layer to 128 lane-dense output columns."""
    p = {}
    for li in (1, 2, 3):
        p[f"w{li}"] = params_f32[f"w{li}"].astype(jnp.bfloat16)
        p[f"b{li}"] = params_f32[f"b{li}"].astype(_EW_DTYPE)
    w4 = params_f32["w4"]
    b4 = params_f32["b4"]
    w4p = jnp.zeros((w4.shape[0], PADDED_OUT), jnp.float32).at[:, :OUTPUT_SIZE].set(w4)
    b4p = jnp.zeros((1, PADDED_OUT), jnp.float32).at[:, :OUTPUT_SIZE].set(b4)
    p["w4"] = w4p.astype(jnp.bfloat16)
    p["b4"] = b4p.astype(_EW_DTYPE)
    return p


def reference_forward(x, prepared):
    """Pure-JAX reference using the same mixed-precision math as the kernel."""
    def dense(h, w, b, relu):
        acc = jnp.dot(h.astype(jnp.bfloat16), w,
                      preferred_element_type=jnp.float32)
        y = acc.astype(_EW_DTYPE) + b
        if relu:
            y = jnp.maximum(y, 0)
        return y.astype(jnp.bfloat16)

    h = dense(x, prepared["w1"], prepared["b1"], relu=True)
    h = dense(h, prepared["w2"], prepared["b2"], relu=True)
    h = dense(h, prepared["w3"], prepared["b3"], relu=True)
    out = dense(h, prepared["w4"], prepared["b4"], relu=False)
    return out[:, :OUTPUT_SIZE]


if __name__ == "__main__":
    key = jax.random.PRNGKey(0)
    key, kx1, kx2 = jax.random.split(key, 3)
    params = prepare_params(init_params(key))

    # Aligned small batch (single grid step, full block).
    batch = 16
    x = jax.random.normal(kx1, (batch, INPUT_SIZE), dtype=jnp.bfloat16)
    out = jax.block_until_ready(benchmark_model_forward(x, params))
    ref = reference_forward(x, params)
    assert out.shape == (batch, OUTPUT_SIZE), out.shape
    assert jnp.allclose(out.astype(jnp.float32), ref.astype(jnp.float32),
                        atol=2e-2, rtol=2e-2), "mismatch vs reference (aligned)"

    # Non-aligned batch: exercises the partial last block (no jnp.pad path).
    batch2 = 13
    x2 = jax.random.normal(kx2, (batch2, INPUT_SIZE), dtype=jnp.bfloat16)
    out2 = jax.block_until_ready(benchmark_model_forward(x2, params))
    ref2 = reference_forward(x2, params)
    assert out2.shape == (batch2, OUTPUT_SIZE), out2.shape
    assert jnp.allclose(out2.astype(jnp.float32), ref2.astype(jnp.float32),
                        atol=2e-2, rtol=2e-2), "mismatch vs reference (partial block)"

    print("KERNEL_OK")
</pallas_src>

<mosaic_0001>
module attributes {stable_mosaic.version = 11 : i64} {
  func.func @_mlp_kernel(%arg0: i32, %arg1: memref<16x128xbf16, #tpu.memory_space<vmem>>, %arg2: memref<128x256xbf16, #tpu.memory_space<vmem>>, %arg3: memref<1x256xbf16, #tpu.memory_space<vmem>>, %arg4: memref<256x512xbf16, #tpu.memory_space<vmem>>, %arg5: memref<1x512xbf16, #tpu.memory_space<vmem>>, %arg6: memref<512x256xbf16, #tpu.memory_space<vmem>>, %arg7: memref<1x256xbf16, #tpu.memory_space<vmem>>, %arg8: memref<256x128xbf16, #tpu.memory_space<vmem>>, %arg9: memref<1x128xbf16, #tpu.memory_space<vmem>>, %arg10: memref<16x128xbf16, #tpu.memory_space<vmem>>) attributes {dimension_semantics = [#tpu.dimension_semantics<parallel>], iteration_bounds = array<i64: 1>, scalar_prefetch = 0 : i64, scratch_operands = 0 : i64, tpu.core_type = #tpu.core_type<tc>, window_params = [{transform_indices = @transform_0, window_bounds = array<i64: 16, 128>}, {pipeline_mode = #tpu.pipeline_mode<synchronous>, transform_indices = @transform_1, window_bounds = array<i64: 128, 256>}, {pipeline_mode = #tpu.pipeline_mode<synchronous>, transform_indices = @transform_2, window_bounds = array<i64: 1, 256>}, {pipeline_mode = #tpu.pipeline_mode<synchronous>, transform_indices = @transform_3, window_bounds = array<i64: 256, 512>}, {pipeline_mode = #tpu.pipeline_mode<synchronous>, transform_indices = @transform_4, window_bounds = array<i64: 1, 512>}, {pipeline_mode = #tpu.pipeline_mode<synchronous>, transform_indices = @transform_5, window_bounds = array<i64: 512, 256>}, {pipeline_mode = #tpu.pipeline_mode<synchronous>, transform_indices = @transform_6, window_bounds = array<i64: 1, 256>}, {pipeline_mode = #tpu.pipeline_mode<synchronous>, transform_indices = @transform_7, window_bounds = array<i64: 256, 128>}, {pipeline_mode = #tpu.pipeline_mode<synchronous>, transform_indices = @transform_8, window_bounds = array<i64: 1, 128>}, {transform_indices = @transform_9, window_bounds = array<i64: 16, 128>}]} {
    %c0 = arith.constant 0 : index
    %c0_0 = arith.constant 0 : index
    %0 = vector.load %arg1[%c0, %c0_0] : memref<16x128xbf16, #tpu.memory_space<vmem>>, vector<16x128xbf16>
    %c0_1 = arith.constant 0 : index
    %c0_2 = arith.constant 0 : index
    %1 = vector.load %arg2[%c0_1, %c0_2] : memref<128x256xbf16, #tpu.memory_space<vmem>>, vector<128x256xbf16>
    %cst = arith.constant dense<0.000000e+00> : vector<16x256xf32>
    %2 = tpu.matmul %0, %1, %cst {dimension_numbers = #tpu.dot_dimension_numbers<[1], [0], [0], [1], [0, 0, 1, 1], [], []>} : vector<16x128xbf16>, vector<128x256xbf16>, vector<16x256xf32> -> vector<16x256xf32>
    %3 = arith.truncf %2 : vector<16x256xf32> to vector<16x256xbf16>
    %c0_3 = arith.constant 0 : index
    %c0_4 = arith.constant 0 : index
    %4 = vector.load %arg3[%c0_3, %c0_4] : memref<1x256xbf16, #tpu.memory_space<vmem>>, vector<1x256xbf16>
    %5 = vector.broadcast %4 : vector<1x256xbf16> to vector<16x256xbf16>
    %6 = arith.addf %3, %5 : vector<16x256xbf16>
    %cst_5 = arith.constant 0.000000e+00 : bf16
    %7 = vector.broadcast %cst_5 : bf16 to vector<16x256xbf16>
    %8 = arith.maximumf %6, %7 : vector<16x256xbf16>
    %c0_6 = arith.constant 0 : index
    %c0_7 = arith.constant 0 : index
    %9 = vector.load %arg4[%c0_6, %c0_7] : memref<256x512xbf16, #tpu.memory_space<vmem>>, vector<256x512xbf16>
    %cst_8 = arith.constant dense<0.000000e+00> : vector<16x512xf32>
    %10 = tpu.matmul %8, %9, %cst_8 {dimension_numbers = #tpu.dot_dimension_numbers<[1], [0], [0], [1], [0, 0, 1, 1], [], []>} : vector<16x256xbf16>, vector<256x512xbf16>, vector<16x512xf32> -> vector<16x512xf32>
    %11 = arith.truncf %10 : vector<16x512xf32> to vector<16x512xbf16>
    %c0_9 = arith.constant 0 : index
    %c0_10 = arith.constant 0 : index
    %12 = vector.load %arg5[%c0_9, %c0_10] : memref<1x512xbf16, #tpu.memory_space<vmem>>, vector<1x512xbf16>
    %13 = vector.broadcast %12 : vector<1x512xbf16> to vector<16x512xbf16>
    %14 = arith.addf %11, %13 : vector<16x512xbf16>
    %cst_11 = arith.constant 0.000000e+00 : bf16
    %15 = vector.broadcast %cst_11 : bf16 to vector<16x512xbf16>
    %16 = arith.maximumf %14, %15 : vector<16x512xbf16>
    %c0_12 = arith.constant 0 : index
    %c0_13 = arith.constant 0 : index
    %17 = vector.load %arg6[%c0_12, %c0_13] : memref<512x256xbf16, #tpu.memory_space<vmem>>, vector<512x256xbf16>
    %cst_14 = arith.constant dense<0.000000e+00> : vector<16x256xf32>
    %18 = tpu.matmul %16, %17, %cst_14 {dimension_numbers = #tpu.dot_dimension_numbers<[1], [0], [0], [1], [0, 0, 1, 1], [], []>} : vector<16x512xbf16>, vector<512x256xbf16>, vector<16x256xf32> -> vector<16x256xf32>
    %19 = arith.truncf %18 : vector<16x256xf32> to vector<16x256xbf16>
    %c0_15 = arith.constant 0 : index
    %c0_16 = arith.constant 0 : index
    %20 = vector.load %arg7[%c0_15, %c0_16] : memref<1x256xbf16, #tpu.memory_space<vmem>>, vector<1x256xbf16>
    %21 = vector.broadcast %20 : vector<1x256xbf16> to vector<16x256xbf16>
    %22 = arith.addf %19, %21 : vector<16x256xbf16>
    %cst_17 = arith.constant 0.000000e+00 : bf16
    %23 = vector.broadcast %cst_17 : bf16 to vector<16x256xbf16>
    %24 = arith.maximumf %22, %23 : vector<16x256xbf16>
    %c0_18 = arith.constant 0 : index
    %c0_19 = arith.constant 0 : index
    %25 = vector.load %arg8[%c0_18, %c0_19] : memref<256x128xbf16, #tpu.memory_space<vmem>>, vector<256x128xbf16>
    %cst_20 = arith.constant dense<0.000000e+00> : vector<16x128xf32>
    %26 = tpu.matmul %24, %25, %cst_20 {dimension_numbers = #tpu.dot_dimension_numbers<[1], [0], [0], [1], [0, 0, 1, 1], [], []>} : vector<16x256xbf16>, vector<256x128xbf16>, vector<16x128xf32> -> vector<16x128xf32>
    %27 = arith.truncf %26 : vector<16x128xf32> to vector<16x128xbf16>
    %c0_21 = arith.constant 0 : index
    %c0_22 = arith.constant 0 : index
    %28 = vector.load %arg9[%c0_21, %c0_22] : memref<1x128xbf16, #tpu.memory_space<vmem>>, vector<1x128xbf16>
    %29 = vector.broadcast %28 : vector<1x128xbf16> to vector<16x128xbf16>
    %30 = arith.addf %27, %29 : vector<16x128xbf16>
    %c0_23 = arith.constant 0 : index
    %c0_24 = arith.constant 0 : index
    %31 = vector.load %arg10[%c0_23, %c0_24] : memref<16x128xbf16, #tpu.memory_space<vmem>>, vector<16x128xbf16>
    tpu.vector_store %arg10[%c0_23, %c0_24], %30 {strides = array<i32>} : memref<16x128xbf16, #tpu.memory_space<vmem>>, vector<16x128xbf16>,
    return
  }
  func.func @transform_0(%arg0: i32) -> (i32, i32) {
    %c0_i32 = arith.constant 0 : i32
    %c0_i32_0 = arith.constant 0 : i32
    return %arg0, %c0_i32 : i32, i32
  }
  func.func @transform_1(%arg0: i32) -> (i32, i32) {
    %c0_i32 = arith.constant 0 : i32
    %c0_i32_0 = arith.constant 0 : i32
    %c0_i32_1 = arith.constant 0 : i32
    return %c0_i32, %c0_i32_0 : i32, i32
  }
  func.func @transform_2(%arg0: i32) -> (i32, i32) {
    %c0_i32 = arith.constant 0 : i32
    %c0_i32_0 = arith.constant 0 : i32
    %c0_i32_1 = arith.constant 0 : i32
    return %c0_i32, %c0_i32_0 : i32, i32
  }
  func.func @transform_3(%arg0: i32) -> (i32, i32) {
    %c0_i32 = arith.constant 0 : i32
    %c0_i32_0 = arith.constant 0 : i32
    %c0_i32_1 = arith.constant 0 : i32
    return %c0_i32, %c0_i32_0 : i32, i32
  }
  func.func @transform_4(%arg0: i32) -> (i32, i32) {
    %c0_i32 = arith.constant 0 : i32
    %c0_i32_0 = arith.constant 0 : i32
    %c0_i32_1 = arith.constant 0 : i32
    return %c0_i32, %c0_i32_0 : i32, i32
  }
  func.func @transform_5(%arg0: i32) -> (i32, i32) {
    %c0_i32 = arith.constant 0 : i32
    %c0_i32_0 = arith.constant 0 : i32
    %c0_i32_1 = arith.constant 0 : i32
    return %c0_i32, %c0_i32_0 : i32, i32
  }
  func.func @transform_6(%arg0: i32) -> (i32, i32) {
    %c0_i32 = arith.constant 0 : i32
    %c0_i32_0 = arith.constant 0 : i32
    %c0_i32_1 = arith.constant 0 : i32
    return %c0_i32, %c0_i32_0 : i32, i32
  }
  func.func @transform_7(%arg0: i32) -> (i32, i32) {
    %c0_i32 = arith.constant 0 : i32
    %c0_i32_0 = arith.constant 0 : i32
    %c0_i32_1 = arith.constant 0 : i32
    return %c0_i32, %c0_i32_0 : i32, i32
  }
  func.func @transform_8(%arg0: i32) -> (i32, i32) {
    %c0_i32 = arith.constant 0 : i32
    %c0_i32_0 = arith.constant 0 : i32
    %c0_i32_1 = arith.constant 0 : i32
    return %c0_i32, %c0_i32_0 : i32, i32
  }
  func.func @transform_9(%arg0: i32) -> (i32, i32) {
    %c0_i32 = arith.constant 0 : i32
    %c0_i32_0 = arith.constant 0 : i32
    return %arg0, %c0_i32 : i32, i32
  }
}

</mosaic_0001>

<bundles_post_ra>
// kernel: benchmark_model_forward.1
= control target key start
LH: loop header
LB: loop body
LE: loop exit
PB: predicated region body
PF: predicated region fallthrough
CT: control target
= control target key end

     0   :  { %14 = vsyncpa [#allocation3], 0  ;;  %s2329_s0 = inlined_call_operand.hbm [shape: bf16[16,128], index: 0, kind: input, shape index: {}]   ;;  %s2330_s1 = inlined_call_operand.hbm [shape: bf16[128,256], index: 1, kind: input, shape index: {}]   ;;  %s2331_s2 = inlined_call_operand.vmem [shape: bf16[1,256], index: 2, kind: input, shape index: {}]   ;;  %s2332_s3 = inlined_call_operand.hbm [shape: bf16[256,512], index: 3, kind: input, shape index: {}]   ;;  %s2333_s4 = inlined_call_operand.vmem [shape: bf16[1,512], index: 4, kind: input, shape index: {}]   ;;  %s2334_s5 = inlined_call_operand.hbm [shape: bf16[512,256], index: 5, kind: input, shape index: {}]   ;;  %s2335_s6 = inlined_call_operand.vmem [shape: bf16[1,256], index: 6, kind: input, shape index: {}]   ;;  %s2336_s7 = inlined_call_operand.hbm [shape: bf16[256,128], index: 7, kind: input, shape index: {}]   ;;  %s2337_s8 = inlined_call_operand.vmem [shape: bf16[1,128], index: 8, kind: input, shape index: {}]   ;;  %s2338_s9 = inlined_call_operand.hbm [shape: bf16[16,128], index: 9, kind: output, shape index: {}]  }
   0x1   :  { %15 = vsyncpa [#allocation6], 0 }
   0x2   :  { %16 = vsyncpa [#allocation9], 0 }
   0x3   :  { %17 = vsyncpa [#allocation4], 0  ;;  %s2129_s30 = smov [#allocation5]   ;;  %s1989_s13 = scalar_lea.hbm %s2330_s1, 2048 }
   0x4   :  { %s35_s10 = sshll.u32 %s2129_s30, 4  ;;  %p1990_p0 = scmp.ne.s32.totalorder %s2330_s1, %s1989_s13  ;;  %s36_s10 = int_to_ptr.vmem [resolvable:$true] %s35_s10 }
   0x5   :  { %p1993_p1 = scmp.lt.u32.totalorder %s1989_s13, %s2330_s1 }
   0x7   :  { %p1995_p2 = pnand %p1993_p1, %p1990_p0 }
   0x9   :  { %1998 = shalt.err (!%p1995_p2)
}
   0xa   :  { %s1999_s18 = scalar_lea.vmem %s36_s10, 2048  ;;  %p2004_p4 = scmp.lt.s32.totalorder %s36_s10, %s36_s10 }
   0xb   :  { %p2000_p3 = scmp.ne.s32.totalorder %s36_s10, %s1999_s18  ;;  %p2005_p5 = scmp.lt.s32.totalorder %s1999_s18, %s1999_s18 }
   0xd   :  { %p2006_p6 = por %p2005_p5, %p2004_p4 }
   0xf   :  { %p2007_p7 = pnand %p2006_p6, %p2000_p3 }
  0x11   :  { %2010 = shalt.err (!%p2007_p7)
}
  0x12   :  { %s2130_s19 = smov 128   ;;  %s2131_s20 = smov 8  }
  0x13   :  { %41 = dma.hbm_to_vmem [thread:$0]  %s2330_s1, 2048, %s36_s10, [#allocation6], %s2130_s19, %s2130_s19, %s2131_s20  }
  0x14   :  { %s2132_s23 = smov [#allocation8]   ;;  %s2133_s25 = smov [#allocation2]  }
  0x15   :  { %s63_s24 = sshll.u32 %s2132_s23, 4  ;;  %s23_s26 = sshll.u32 %s2133_s25, 4  ;;  %s64_s24 = int_to_ptr.vmem [resolvable:$true] %s63_s24  ;;  %s24_s26 = int_to_ptr.vmem [resolvable:$true] %s23_s26 }
  0x16   :  { %s2011_s29 = scalar_lea.hbm %s2334_s5, 8192 }
  0x17   :  { %p2012_p8 = scmp.ne.s32.totalorder %s2334_s5, %s2011_s29  ;;  %p2015_p9 = scmp.lt.u32.totalorder %s2011_s29, %s2334_s5 }
  0x19   :  { %p2017_p10 = pnand %p2015_p9, %p2012_p8 }
  0x1b   :  { %2020 = shalt.err (!%p2017_p10)
}
  0x1c   :  { %s2021_s1 = scalar_lea.vmem %s64_s24, 8192  ;;  %p2026_p12 = scmp.lt.s32.totalorder %s64_s24, %s64_s24 }
  0x1d   :  { %p2022_p11 = scmp.ne.s32.totalorder %s64_s24, %s2021_s1  ;;  %p2027_p13 = scmp.lt.s32.totalorder %s2021_s1, %s2021_s1 }
  0x1f   :  { %p2028_p0 = por %p2027_p13, %p2026_p12 }
  0x21   :  { %p2029_p1 = pnand %p2028_p0, %p2022_p11 }
  0x23   :  { %2032 = shalt.err (!%p2029_p1)
}
  0x24   :  { %69 = dma.hbm_to_vmem [thread:$0]  %s2334_s5, 8192, %s64_s24, [#allocation9], %s2130_s19, %s2130_s19, %s2131_s20  }
  0x25   :  { %s2033_s17 = scalar_lea.hbm %s2329_s0, 128 }
  0x26   :  { %p2034_p2 = scmp.ne.s32.totalorder %s2329_s0, %s2033_s17  ;;  %p2037_p3 = scmp.lt.u32.totalorder %s2033_s17, %s2329_s0 }
  0x28   :  { %p2039_p4 = pnand %p2037_p3, %p2034_p2 }
  0x2a   :  { %2042 = shalt.err (!%p2039_p4)
}
  0x2b   :  { %s2043_s25 = scalar_lea.vmem %s24_s26, 128  ;;  %p2048_p6 = scmp.lt.s32.totalorder %s24_s26, %s24_s26 }
  0x2c   :  { %p2044_p5 = scmp.ne.s32.totalorder %s24_s26, %s2043_s25  ;;  %p2049_p7 = scmp.lt.s32.totalorder %s2043_s25, %s2043_s25 }
  0x2e   :  { %p2050_p8 = por %p2049_p7, %p2048_p6 }
  0x30   :  { %p2051_p9 = pnand %p2050_p8, %p2044_p5 }
  0x32   :  { %2054 = shalt.err (!%p2051_p9)
}
  0x33   :  { %s2134_s5 = smov 64   ;;  %s2135_s19 = smov 4  }
  0x34   :  { %29 = dma.hbm_to_vmem [thread:$0]  %s2329_s0, 128, %s24_s26, [#allocation3], %s2134_s5, %s2134_s5, %s2135_s19  }
  0x35   :  { %s2136_s27 = smov [#allocation7]   ;;  %s2055_s11 = scalar_lea.hbm %s2332_s3, 8192 }
  0x36   :  { %s49_s28 = sshll.u32 %s2136_s27, 4  ;;  %p2056_p10 = scmp.ne.s32.totalorder %s2332_s3, %s2055_s11  ;;  %s50_s28 = int_to_ptr.vmem [resolvable:$true] %s49_s28 }
  0x37   :  { %p2059_p11 = scmp.lt.u32.totalorder %s2055_s11, %s2332_s3 }
  0x39   :  { %p2061_p12 = pnand %p2059_p11, %p2056_p10 }
  0x3b   :  { %2064 = shalt.err (!%p2061_p12)
}
  0x3c   :  { %s2065_s14 = scalar_lea.vmem %s50_s28, 8192  ;;  %p2070_p0 = scmp.lt.s32.totalorder %s50_s28, %s50_s28 }
  0x3d   :  { %p2066_p13 = scmp.ne.s32.totalorder %s50_s28, %s2065_s14  ;;  %p2071_p1 = scmp.lt.s32.totalorder %s2065_s14, %s2065_s14 }
  0x3f   :  { %p2072_p2 = por %p2071_p1, %p2070_p0 }
  0x41   :  { %p2073_p3 = pnand %p2072_p2, %p2066_p13 }
  0x43   :  { %2076 = shalt.err (!%p2073_p3)
}
  0x44   :  { %s2137_s0 = smov 256   ;;  %s2138_s26 = smov 16  }
  0x45   :  { %55 = dma.hbm_to_vmem [thread:$0]  %s2332_s3, 8192, %s50_s28, [#allocation6], %s2137_s0, %s2137_s0, %s2138_s26  }
  0x46   :  { %s2139_s17 = smov [#allocation10]   ;;  %s2077_s23 = scalar_lea.hbm %s2336_s7, 2048 }
  0x47   :  { %s77_s18 = sshll.u32 %s2139_s17, 4  ;;  %p2078_p4 = scmp.ne.s32.totalorder %s2336_s7, %s2077_s23  ;;  %s78_s18 = int_to_ptr.vmem [resolvable:$true] %s77_s18 }
  0x48   :  { %p2081_p5 = scmp.lt.u32.totalorder %s2077_s23, %s2336_s7 }
  0x4a   :  { %p2083_p6 = pnand %p2081_p5, %p2078_p4 }
  0x4c   :  { %2086 = shalt.err (!%p2083_p6)
}
  0x4d   :  { %s2087_s29 = scalar_lea.vmem %s78_s18, 2048  ;;  %p2092_p8 = scmp.lt.s32.totalorder %s78_s18, %s78_s18 }
  0x4e   :  { %p2088_p7 = scmp.ne.s32.totalorder %s78_s18, %s2087_s29  ;;  %p2093_p9 = scmp.lt.s32.totalorder %s2087_s29, %s2087_s29 }
  0x50   :  { %p2094_p10 = por %p2093_p9, %p2092_p8 }
  0x52   :  { %p2095_p11 = pnand %p2094_p10, %p2088_p7 }
  0x54   :  { %2098 = shalt.err (!%p2095_p11)
}
  0x55   :  { %83 = dma.hbm_to_vmem [thread:$0]  %s2336_s7, 2048, %s78_s18, [#allocation9], %s2134_s5, %s2134_s5, %s2135_s19  }
  0x56   :  { %2121 = dma.done.wait [#allocation3], 128  }
  0x57   :  { %2122 = vsyncadd [#allocation3], 4294967168 }
  0x58   :  { %2123 = dma.done.wait [#allocation6], 10240  }
  0x59   :  { %2124 = vsyncadd [#allocation6], 4294957056 }
  0x5a   :  { %2125 = dma.done.wait [#allocation9], 10240  }
  0x5b   :  { %2126 = vsyncadd [#allocation9], 4294957056  ;;  %v2140_v0 = vmov 0   ;;  %v1756_v1 = vld [vmem:[#allocation5 + $0x4] ss:$8 sps:$4 sm:$0xff]   ;;  %v1780_v29 = vld [vmem:[#allocation2] sm:$0xff]  }
  0x5c   :  { %238 = vmatprep.mubr.bf16.mxu0 %v2140_v0  ;;  %v1758_v2 = vld [vmem:[#allocation5] ss:$8 sps:$4 sm:$0xff]   ;;  %206 = vmatprep.subr.bf16.mxu0 %v1756_v1  ;;  %v1759_v3 = vld [vmem:[#allocation5 + $0x14] ss:$8 sps:$4 sm:$0xff]   ;;  %v1761_v4 = vld [vmem:[#allocation5 + $0x10] ss:$8 sps:$4 sm:$0xff]  }
  0x5d   :  { %207 = vmatpush1.bf16.msra.mxu0 %v1758_v2  ;;  %v1762_v5 = vld [vmem:[#allocation5 + $0x24] ss:$8 sps:$4 sm:$0xff]   ;;  %v1764_v6 = vld [vmem:[#allocation5 + $0x20] ss:$8 sps:$4 sm:$0xff]   ;;  %v1765_v7 = vld [vmem:[#allocation5 + $0x34] ss:$8 sps:$4 sm:$0xff]  }
  0x5e   :  { %208 = vmatprep.subr.bf16.mxu0 %v1759_v3  ;;  %v1767_v8 = vld [vmem:[#allocation5 + $0x30] ss:$8 sps:$4 sm:$0xff]   ;;  %v1768_v9 = vld [vmem:[#allocation5 + $0x44] ss:$8 sps:$4 sm:$0xff]   ;;  %v1770_v11 = vld [vmem:[#allocation5 + $0x40] ss:$8 sps:$4 sm:$0xff]  }
  0x5f   :  { %v1781_v10 = vld [vmem:[#allocation7 + $0x4] ss:$16 sps:$4 sm:$0xff]   ;;  %v1786_v12 = vld [vmem:[#allocation7] ss:$16 sps:$4 sm:$0xff]   ;;  %v1785_v26 = vld [vmem:[#allocation7 + $0xc] ss:$16 sps:$4 sm:$0xff]  }
  0x60   :  { %677 = vmatprep.subr.bf16.mxu1 %v1781_v10  ;;  %v1787_v13 = vld [vmem:[#allocation7 + $0x24] ss:$16 sps:$4 sm:$0xff]   ;;  %v1792_v15 = vld [vmem:[#allocation7 + $0x20] ss:$16 sps:$4 sm:$0xff]   ;;  %v1783_v30 = vld [vmem:[#allocation7 + $0x8] ss:$16 sps:$4 sm:$0xff]  }
  0x61   :  { %209 = vmatpush1.bf16.msra.mxu0 %v1761_v4  ;;  %v1771_v14 = vld [vmem:[#allocation5 + $0x54] ss:$8 sps:$4 sm:$0xff]   ;;  %678 = vmatpush1.bf16.msra.mxu1 %v1786_v12  ;;  %v1773_v17 = vld [vmem:[#allocation5 + $0x50] ss:$8 sps:$4 sm:$0xff]   ;;  %v1774_v18 = vld [vmem:[#allocation5 + $0x64] ss:$8 sps:$4 sm:$0xff]  }
  0x62   :  { %210 = vmatprep.subr.bf16.mxu0 %v1762_v5  ;;  %679 = vmatprep.subr.bf16.mxu1 %v1787_v13  ;;  %v1793_v16 = vld [vmem:[#allocation7 + $0x44] ss:$16 sps:$4 sm:$0xff]   ;;  %v1798_v19 = vld [vmem:[#allocation7 + $0x40] ss:$16 sps:$4 sm:$0xff]   ;;  %v1791_v31 = vld [vmem:[#allocation7 + $0x2c] ss:$16 sps:$4 sm:$0xff]  }
  0x63   :  { %v1799_v20 = vld [vmem:[#allocation7 + $0x64] ss:$16 sps:$4 sm:$0xff]   ;;  %v1776_v21 = vld [vmem:[#allocation5 + $0x60] ss:$8 sps:$4 sm:$0xff]   ;;  %v1779_v25 = vld [vmem:[#allocation5 + $0x70] ss:$8 sps:$4 sm:$0xff]  }
  0x64   :  { %v1777_v22 = vld [vmem:[#allocation5 + $0x74] ss:$8 sps:$4 sm:$0xff]   ;;  %v1804_v23 = vld [vmem:[#allocation7 + $0x60] ss:$16 sps:$4 sm:$0xff]   ;;  %v1789_v34 = vld [vmem:[#allocation7 + $0x28] ss:$16 sps:$4 sm:$0xff]  }
  0x65   :  { %211 = vmatpush1.bf16.msra.mxu0 %v1764_v6  ;;  %680 = vmatpush1.bf16.msra.mxu1 %v1792_v15  ;;  %v1805_v24 = vld [vmem:[#allocation7 + $0x84] ss:$16 sps:$4 sm:$0xff]   ;;  %v1810_v27 = vld [vmem:[#allocation7 + $0x80] ss:$16 sps:$4 sm:$0xff]   ;;  %v1797_v35 = vld [vmem:[#allocation7 + $0x4c] ss:$16 sps:$4 sm:$0xff]  }
  0x66   :  { %212 = vmatprep.subr.bf16.mxu0 %v1765_v7  ;;  %681 = vmatprep.subr.bf16.mxu1 %v1793_v16  ;;  %v1811_v28 = vld [vmem:[#allocation7 + $0xa4] ss:$16 sps:$4 sm:$0xff]   ;;  %v1816_v32 = vld [vmem:[#allocation7 + $0xa0] ss:$16 sps:$4 sm:$0xff]   ;;  %v1795_v38 = vld [vmem:[#allocation7 + $0x48] ss:$16 sps:$4 sm:$0xff]  }
  0x67   :  { %v1817_v33 = vld [vmem:[#allocation7 + $0xc4] ss:$16 sps:$4 sm:$0xff]   ;;  %v1822_v36 = vld [vmem:[#allocation7 + $0xc0] ss:$16 sps:$4 sm:$0xff]   ;;  %v1803_v39 = vld [vmem:[#allocation7 + $0x6c] ss:$16 sps:$4 sm:$0xff]  }
  0x68   :  { %v1823_v37 = vld [vmem:[#allocation7 + $0xe4] ss:$16 sps:$4 sm:$0xff]   ;;  %v1828_v40 = vld [vmem:[#allocation7 + $0xe0] ss:$16 sps:$4 sm:$0xff]   ;;  %v1801_v42 = vld [vmem:[#allocation7 + $0x68] ss:$16 sps:$4 sm:$0xff]  }
  0x69   :  { %213 = vmatpush1.bf16.msra.mxu0 %v1767_v8  ;;  %682 = vmatpush1.bf16.msra.mxu1 %v1798_v19  ;;  %v1829_v41 = vld [vmem:[#allocation7 + $0x104] ss:$16 sps:$4 sm:$0xff]   ;;  %v1809_v43 = vld [vmem:[#allocation7 + $0x8c] ss:$16 sps:$4 sm:$0xff]   ;;  %v1834_v44 = vld [vmem:[#allocation7 + $0x100] ss:$16 sps:$4 sm:$0xff]  }
  0x6a   :  { %214 = vmatprep.subr.bf16.mxu0 %v1768_v9  ;;  %683 = vmatprep.subr.bf16.mxu1 %v1799_v20  ;;  %v1835_v45 = vld [vmem:[#allocation7 + $0x124] ss:$16 sps:$4 sm:$0xff]   ;;  %v1807_v46 = vld [vmem:[#allocation7 + $0x88] ss:$16 sps:$4 sm:$0xff]   ;;  %v1815_v47 = vld [vmem:[#allocation7 + $0xac] ss:$16 sps:$4 sm:$0xff]  }
  0x6b   :  { %v1840_v48 = vld [vmem:[#allocation7 + $0x120] ss:$16 sps:$4 sm:$0xff]   ;;  %v1841_v49 = vld [vmem:[#allocation7 + $0x144] ss:$16 sps:$4 sm:$0xff]   ;;  %v1813_v50 = vld [vmem:[#allocation7 + $0xa8] ss:$16 sps:$4 sm:$0xff]  }
  0x6c   :  { %v1821_v51 = vld [vmem:[#allocation7 + $0xcc] ss:$16 sps:$4 sm:$0xff]   ;;  %v1846_v52 = vld [vmem:[#allocation7 + $0x140] ss:$16 sps:$4 sm:$0xff]   ;;  %v1847_v53 = vld [vmem:[#allocation7 + $0x164] ss:$16 sps:$4 sm:$0xff]  }
  0x6d   :  { %215 = vmatpush1.bf16.msra.mxu0 %v1770_v11  ;;  %684 = vmatpush1.bf16.msra.mxu1 %v1804_v23  ;;  %v1819_v54 = vld [vmem:[#allocation7 + $0xc8] ss:$16 sps:$4 sm:$0xff]   ;;  %v1827_v55 = vld [vmem:[#allocation7 + $0xec] ss:$16 sps:$4 sm:$0xff]   ;;  %v1852_v56 = vld [vmem:[#allocation7 + $0x160] ss:$16 sps:$4 sm:$0xff]  }
  0x6e   :  { %216 = vmatprep.subr.bf16.mxu0 %v1771_v14  ;;  %685 = vmatprep.subr.bf16.mxu1 %v1805_v24  ;;  %v1853_v57 = vld [vmem:[#allocation7 + $0x184] ss:$16 sps:$4 sm:$0xff]   ;;  %v1825_v58 = vld [vmem:[#allocation7 + $0xe8] ss:$16 sps:$4 sm:$0xff]   ;;  %v1833_v59 = vld [vmem:[#allocation7 + $0x10c] ss:$16 sps:$4 sm:$0xff]  }
  0x6f   :  { %v1858_v60 = vld [vmem:[#allocation7 + $0x180] ss:$16 sps:$4 sm:$0xff]   ;;  %v1859_v61 = vld [vmem:[#allocation7 + $0x1a4] ss:$16 sps:$4 sm:$0xff]   ;;  %v1831_v62 = vld [vmem:[#allocation7 + $0x108] ss:$16 sps:$4 sm:$0xff]  }
  0x70   :  { %v1839_v63 = vld [vmem:[#allocation7 + $0x12c] ss:$16 sps:$4 sm:$0xff]   ;;  %v1837_v1 = vld [vmem:[#allocation7 + $0x128] ss:$16 sps:$4 sm:$0xff]   ;;  %v1864_v10 = vld [vmem:[#allocation7 + $0x1a0] ss:$16 sps:$4 sm:$0xff]  }
  0x71   :  { %217 = vmatpush1.bf16.msra.mxu0 %v1773_v17  ;;  %686 = vmatpush1.bf16.msra.mxu1 %v1810_v27  ;;  %v1845_v2 = vld [vmem:[#allocation7 + $0x14c] ss:$16 sps:$4 sm:$0xff]   ;;  %v1843_v3 = vld [vmem:[#allocation7 + $0x148] ss:$16 sps:$4 sm:$0xff]   ;;  %v1865_v11 = vld [vmem:[#allocation7 + $0x1c4] ss:$16 sps:$4 sm:$0xff]  }
  0x72   :  { %218 = vmatprep.subr.bf16.mxu0 %v1774_v18  ;;  %687 = vmatprep.subr.bf16.mxu1 %v1811_v28  ;;  %v1851_v4 = vld [vmem:[#allocation7 + $0x16c] ss:$16 sps:$4 sm:$0xff]   ;;  %v1849_v5 = vld [vmem:[#allocation7 + $0x168] ss:$16 sps:$4 sm:$0xff]   ;;  %v1870_v14 = vld [vmem:[#allocation7 + $0x1c0] ss:$16 sps:$4 sm:$0xff]  }
  0x73   :  { %v1857_v6 = vld [vmem:[#allocation7 + $0x18c] ss:$16 sps:$4 sm:$0xff]   ;;  %v1855_v7 = vld [vmem:[#allocation7 + $0x188] ss:$16 sps:$4 sm:$0xff]   ;;  %v1871_v15 = vld [vmem:[#allocation7 + $0x1e4] ss:$16 sps:$4 sm:$0xff]  }
  0x74   :  { %v1863_v8 = vld [vmem:[#allocation7 + $0x1ac] ss:$16 sps:$4 sm:$0xff]   ;;  %v1861_v9 = vld [vmem:[#allocation7 + $0x1a8] ss:$16 sps:$4 sm:$0xff]   ;;  %v1876_v18 = vld [vmem:[#allocation7 + $0x1e0] ss:$16 sps:$4 sm:$0xff]  }
  0x75   :  { %219 = vmatpush1.bf16.msra.mxu0 %v1776_v21  ;;  %688 = vmatpush1.bf16.msra.mxu1 %v1816_v32  ;;  %v1869_v12 = vld [vmem:[#allocation7 + $0x1cc] ss:$16 sps:$4 sm:$0xff]   ;;  %v1867_v13 = vld [vmem:[#allocation7 + $0x1c8] ss:$16 sps:$4 sm:$0xff]   ;;  %v2141_v20 = vmov 1966171168  }
  0x76   :  { %220 = vmatprep.subr.bf16.mxu0 %v1777_v22  ;;  %689 = vmatprep.subr.bf16.mxu1 %v1817_v33  ;;  %v1875_v16 = vld [vmem:[#allocation7 + $0x1ec] ss:$16 sps:$4 sm:$0xff]   ;;  %v1873_v17 = vld [vmem:[#allocation7 + $0x1e8] ss:$16 sps:$4 sm:$0xff]   ;;  %v262_v21 = vunpack.c.l.s4 %v2141_v20  ;;  %v264_v22 = vlaneseq  ;;  %s2142_s1 = smov [#allocation11]  }
  0x77   :  { %v1879_v19 = vld [vmem:[#allocation8 + $0x4] ss:$8 sps:$4 sm:$0xff]   ;;  %v1979_v20 = vld [vmem:[#allocation10 + $0x58] sm:$0xff]   ;;  %s1536_s10 = sshll.u32 %s2142_s1, 4  ;;  %s1537_s10 = int_to_ptr.vmem [resolvable:$true] %s1536_s10 }
  0x78   :  { %v263_v23 = vunpack.c.0.s8 %v262_v21  ;;  %v265_v24 = vshrl.u32 %v264_v22, 7  ;;  %v1980_v21 = vld [vmem:[#allocation10 + $0x18] sm:$0xff]   ;;  %v1981_v22 = vld [vmem:[#allocation10 + $0x60] sm:$0xff]   ;;  %s2099_s14 = scalar_lea.vmem %s1537_s10, 128  ;;  %p2104_p13 = scmp.lt.s32.totalorder %s1537_s10, %s1537_s10 }
  0x79   :  { %221 = vmatpush1.bf16.msra.mxu0 %v1779_v25  ;;  %690 = vmatpush1.bf16.msra.mxu1 %v1822_v36  ;;  %v1567_v25 = vld.sshfl [vmem:[%s2331_s2] sm:$0x11 pattern:$0x75316420]  ;;  %p2100_p12 = scmp.ne.s32.totalorder %s1537_s10, %s2099_s14  ;;  %p2105_p0 = scmp.lt.s32.totalorder %s2099_s14, %s2099_s14 }
  0x7a   :  { %720 = vmatprep.subr.bf16.mxu0 %v1785_v26  ;;  %691 = vmatprep.subr.bf16.mxu1 %v1823_v37  ;;  %v2263_v26 = vsub.s32 %v263_v23, %v265_v24  ;;  %v260_v27 = vcombine.high %v1567_v25, %v1567_v25  ;;  %v1982_v23 = vld [vmem:[#allocation10 + $0x20] sm:$0xff]  }
  0x7b   :  { %p2106_p1 = por %p2105_p0, %p2104_p13 }
  0x7c   :  { %239 = vmatmul.mubr.bf16.vlgmr.msra.gmra.mrb[0].mxu0 %v1780_v29  ;;  %v267_v28 = vrot.slane %v1567_v25, %v2263_v26  ;;  %v274_v29 = vrot.slane %v260_v27, %v2263_v26  ;;  %v1632_v25 = vld.sshfl [vmem:[%s2333_s4] sm:$0x33 pattern:$0x75316420] }
  0x7d   :  { %721 = vmatpush1.bf16.msra.mxu0 %v1783_v30  ;;  %692 = vmatpush1.bf16.msra.mxu1 %v1828_v40  ;;  %v776_v27 = vcombine.high %v1632_v25, %v1632_v25  ;;  %p2107_p2 = pnand %p2106_p1, %p2100_p12 }
  0x7e   :  { %722 = vmatprep.subr.bf16.mxu0 %v1791_v31  ;;  %693 = vmatprep.subr.bf16.mxu1 %v1829_v41  ;;  %v276_v30 = vpack.i.b16 %v267_v28, %v267_v28  ;;  %v2267_v31 = vsub.s32 0, %v265_v24  ;;  %v283_v32 = vpack.i.b16 %v274_v29, %v274_v29  ;;  %v1983_v24 = vld [vmem:[#allocation10 + $0x68] sm:$0xff]  }
  0x7f   :  { %v790_v28 = vrot.slane %v776_v27, %v2263_v26  ;;  %v1970_v27 = vld [vmem:[#allocation8 + $0x1f0] ss:$8 sps:$4 sm:$0xff]  }
  0x80   :  { %v288_v37 = vrot.slane %v283_v32, %v2267_v31 }
  0x81   :  { %723 = vmatpush1.bf16.msra.mxu0 %v1789_v34  ;;  %694 = vmatpush1.bf16.msra.mxu1 %v1834_v44  ;;  %v1877_v44 = vld [vmem:[#allocation8] ss:$8 sps:$4 sm:$0xff]   ;;  %v792_v29 = vcombine.high %v790_v28, %v790_v28 }
  0x82   :  { %724 = vmatprep.subr.bf16.mxu0 %v1797_v35  ;;  %695 = vmatprep.subr.bf16.mxu1 %v1835_v45  ;;  %v281_v35 = vrot.slane %v276_v30, %v2267_v31  ;;  %v2278_v30 = vrot.slane %v1632_v25, %v2263_v26  ;;  %v1972_v25 = vld [vmem:[#allocation8 + $0x1f4] ss:$8 sps:$4 sm:$0xff]  }
  0x84   :  { %v794_v32 = vpack.i.b16 %v2278_v30, %v2278_v30 }
  0x85   :  { %725 = vmatpush1.bf16.msra.mxu0 %v1795_v38  ;;  %696 = vmatpush1.bf16.msra.mxu1 %v1840_v48  ;;  %v1885_v48 = vld [vmem:[#allocation8 + $0x24] ss:$8 sps:$4 sm:$0xff]  }
  0x86   :  { %726 = vmatprep.subr.bf16.mxu0 %v1803_v39  ;;  %697 = vmatprep.subr.bf16.mxu1 %v1841_v49  ;;  %v1883_v49 = vld [vmem:[#allocation8 + $0x20] ss:$8 sps:$4 sm:$0xff]  }
  0x89   :  { %727 = vmatpush1.bf16.msra.mxu0 %v1801_v42  ;;  %698 = vmatpush1.bf16.msra.mxu1 %v1846_v52  ;;  %v1891_v52 = vld [vmem:[#allocation8 + $0x44] ss:$8 sps:$4 sm:$0xff]  }
  0x8a   :  { %728 = vmatprep.subr.bf16.mxu0 %v1809_v43  ;;  %699 = vmatprep.subr.bf16.mxu1 %v1847_v53  ;;  %v1889_v53 = vld [vmem:[#allocation8 + $0x40] ss:$8 sps:$4 sm:$0xff]  }
  0x8d   :  { %729 = vmatpush1.bf16.msra.mxu0 %v1807_v46  ;;  %700 = vmatpush1.bf16.msra.mxu1 %v1852_v56  ;;  %v1882_v46 = vld [vmem:[#allocation8 + $0x14] ss:$8 sps:$4 sm:$0xff]   ;;  %v1897_v56 = vld [vmem:[#allocation8 + $0x64] ss:$8 sps:$4 sm:$0xff]  }
  0x8e   :  { %730 = vmatprep.subr.bf16.mxu0 %v1815_v47  ;;  %701 = vmatprep.subr.bf16.mxu1 %v1853_v57  ;;  %v1880_v47 = vld [vmem:[#allocation8 + $0x10] ss:$8 sps:$4 sm:$0xff]   ;;  %v1895_v57 = vld [vmem:[#allocation8 + $0x60] ss:$8 sps:$4 sm:$0xff]  }
  0x91   :  { %731 = vmatpush1.bf16.msra.mxu0 %v1813_v50  ;;  %702 = vmatpush1.bf16.msra.mxu1 %v1858_v60  ;;  %v1888_v50 = vld [vmem:[#allocation8 + $0x34] ss:$8 sps:$4 sm:$0xff]   ;;  %v1903_v60 = vld [vmem:[#allocation8 + $0x84] ss:$8 sps:$4 sm:$0xff]  }
  0x92   :  { %732 = vmatprep.subr.bf16.mxu0 %v1821_v51  ;;  %703 = vmatprep.subr.bf16.mxu1 %v1859_v61  ;;  %v1886_v51 = vld [vmem:[#allocation8 + $0x30] ss:$8 sps:$4 sm:$0xff]   ;;  %v1901_v61 = vld [vmem:[#allocation8 + $0x80] ss:$8 sps:$4 sm:$0xff]  }
  0x95   :  { %733 = vmatpush1.bf16.msra.mxu0 %v1819_v54  ;;  %704 = vmatpush1.bf16.msra.mxu1 %v1864_v10  ;;  %v1894_v54 = vld [vmem:[#allocation8 + $0x54] ss:$8 sps:$4 sm:$0xff]   ;;  %v1919_v10 = vld [vmem:[#allocation8 + $0xe0] ss:$8 sps:$4 sm:$0xff]  }
  0x96   :  { %734 = vmatprep.subr.bf16.mxu0 %v1827_v55  ;;  %705 = vmatprep.subr.bf16.mxu1 %v1865_v11  ;;  %v1892_v55 = vld [vmem:[#allocation8 + $0x50] ss:$8 sps:$4 sm:$0xff]   ;;  %v1924_v11 = vld [vmem:[#allocation8 + $0xf4] ss:$8 sps:$4 sm:$0xff]  }
  0x99   :  { %735 = vmatpush1.bf16.msra.mxu0 %v1825_v58  ;;  %706 = vmatpush1.bf16.msra.mxu1 %v1870_v14  ;;  %v1900_v58 = vld [vmem:[#allocation8 + $0x74] ss:$8 sps:$4 sm:$0xff]   ;;  %v1973_v14 = vld [vmem:[#allocation10 + $0x40] sm:$0xff]  }
  0x9a   :  { %736 = vmatprep.subr.bf16.mxu0 %v1833_v59  ;;  %707 = vmatprep.subr.bf16.mxu1 %v1871_v15  ;;  %v1898_v59 = vld [vmem:[#allocation8 + $0x70] ss:$8 sps:$4 sm:$0xff]   ;;  %v1974_v15 = vld [vmem:[#allocation10] sm:$0xff]  }
  0x9d   :  { %737 = vmatpush1.bf16.msra.mxu0 %v1831_v62  ;;  %708 = vmatpush1.bf16.msra.mxu1 %v1876_v18  ;;  %v1906_v62 = vld [vmem:[#allocation8 + $0x94] ss:$8 sps:$4 sm:$0xff]  }
  0x9e   :  { %738 = vmatprep.subr.bf16.mxu0 %v1839_v63  ;;  %1213 = vmatprep.subr.bf16.mxu1 %v1879_v19  ;;  %v1904_v63 = vld [vmem:[#allocation8 + $0x90] ss:$8 sps:$4 sm:$0xff]  }
  0x9f   :  { %v1977_v18 = vld [vmem:[#allocation10 + $0x50] sm:$0xff]  }
  0xa0   :  { %v1978_v19 = vld [vmem:[#allocation10 + $0x10] sm:$0xff]  }
  0xa1   :  { %739 = vmatpush1.bf16.msra.mxu0 %v1837_v1  ;;  %v1909_v1 = vld [vmem:[#allocation8 + $0xa4] ss:$8 sps:$4 sm:$0xff]  }
  0xa2   :  { %740 = vmatprep.subr.bf16.mxu0 %v1845_v2  ;;  %v1907_v2 = vld [vmem:[#allocation8 + $0xa0] ss:$8 sps:$4 sm:$0xff]  }
  0xa5   :  { %741 = vmatpush1.bf16.msra.mxu0 %v1843_v3  ;;  %v1912_v3 = vld [vmem:[#allocation8 + $0xb4] ss:$8 sps:$4 sm:$0xff]  }
  0xa6   :  { %742 = vmatprep.subr.bf16.mxu0 %v1851_v4  ;;  %v1910_v4 = vld [vmem:[#allocation8 + $0xb0] ss:$8 sps:$4 sm:$0xff]  }
  0xa9   :  { %743 = vmatpush1.bf16.msra.mxu0 %v1849_v5  ;;  %v1915_v5 = vld [vmem:[#allocation8 + $0xc4] ss:$8 sps:$4 sm:$0xff]  }
  0xaa   :  { %744 = vmatprep.subr.bf16.mxu0 %v1857_v6  ;;  %v1913_v6 = vld [vmem:[#allocation8 + $0xc0] ss:$8 sps:$4 sm:$0xff]  }
  0xad   :  { %745 = vmatpush1.bf16.msra.mxu0 %v1855_v7  ;;  %v1918_v7 = vld [vmem:[#allocation8 + $0xd4] ss:$8 sps:$4 sm:$0xff]  }
  0xae   :  { %746 = vmatprep.subr.bf16.mxu0 %v1863_v8  ;;  %v1916_v8 = vld [vmem:[#allocation8 + $0xd0] ss:$8 sps:$4 sm:$0xff]  }
  0xb1   :  { %747 = vmatpush1.bf16.msra.mxu0 %v1861_v9  ;;  %v1921_v9 = vld [vmem:[#allocation8 + $0xe4] ss:$8 sps:$4 sm:$0xff]  }
  0xb2   :  { %748 = vmatprep.subr.bf16.mxu0 %v1869_v12  ;;  %v1922_v12 = vld [vmem:[#allocation8 + $0xf0] ss:$8 sps:$4 sm:$0xff]  }
  0xb5   :  { %749 = vmatpush1.bf16.msra.mxu0 %v1867_v13  ;;  %v1927_v13 = vld [vmem:[#allocation8 + $0x104] ss:$8 sps:$4 sm:$0xff]  }
  0xb6   :  { %750 = vmatprep.subr.bf16.mxu0 %v1875_v16  ;;  %v1975_v16 = vld [vmem:[#allocation10 + $0x48] sm:$0xff]  }
  0xb9   :  { %751 = vmatpush1.bf16.msra.mxu0 %v1873_v17  ;;  %v1976_v17 = vld [vmem:[#allocation10 + $0x8] sm:$0xff]  }
  0xba   :  { %1716 = vmatprep.subr.bf16.mxu0 %v1973_v14  ;;  %v1960_v14 = vld [vmem:[#allocation8 + $0x1b4] ss:$8 sps:$4 sm:$0xff]  }
 0x14f   :  { %v240_v33 = vpop.f32.mrb[0].mxu0 }
 0x150   :  { %v242_v34 = vpop.f32.mrb[1].mxu0 }
 0x151   :  { %v244_v36 = vpop.f32.mrb[2].mxu0 }
 0x152   :  { %v249_v38 = vpack.c.bf16 %v244_v36, %v240_v33  ;;  %v246_v39 = vpop.f32.mrb[3].mxu0  ;;  %v801_v33 = vpack.i.b16 %v790_v28, %v790_v28 }
 0x153   :  { %v250_v40 = vpack.c.bf16 %v246_v39, %v242_v34  ;;  %v815_v34 = vpack.i.b16 %v792_v29, %v792_v29  ;;  %v799_v39 = vrot.slane %v794_v32, %v2267_v31  ;;  %v1985_v32 = vld [vmem:[#allocation10 + $0x70] sm:$0xff]  }
 0x154   :  { %v289_v41 = vadd.bf16 %v281_v35, %v249_v38 }
 0x155   :  { %v290_v42 = vadd.bf16 %v288_v37, %v250_v40 }
 0x156   :  { %v291_v45 = vmax.bf16 %v2140_v0, %v289_v41 }
 0x157   :  { %v292_v43 = vmax.bf16 %v2140_v0, %v290_v42  ;;  %v806_v42 = vrot.slane %v801_v33, %v2267_v31  ;;  %v1986_v33 = vld [vmem:[#allocation10 + $0x30] sm:$0xff]  }
 0x159   :  { %709 = vmatprep.mubr.bf16.mxu1 %v292_v43  ;;  %752 = vmatprep.mubr.bf16.mxu0 %v292_v43  ;;  %v820_v43 = vrot.slane %v815_v34, %v2267_v31  ;;  %v1987_v34 = vld [vmem:[#allocation10 + $0x78] sm:$0xff]  }
 0x15a   :  { %710 = vmatmul.mubr.bf16.vlgmr.msra.gmra.mrb[0].mxu1 %v291_v45  ;;  %753 = vmatmul.mubr.bf16.vlgmr.msra.gmra.mrb[4].mxu0 %v291_v45 }
 0x15b   :  { %1214 = vmatpush1.bf16.msra.mxu1 %v1877_v44  ;;  %1717 = vmatpush3.bf16.msra.mxu0 %v1974_v15  ;;  %v1958_v15 = vld [vmem:[#allocation8 + $0x1b0] ss:$8 sps:$4 sm:$0xff]  }
 0x15c   :  { %1215 = vmatprep.subr.bf16.mxu1 %v1882_v46  ;;  %1718 = vmatprep.subr.bf16.mxu0 %v1975_v16  ;;  %v1963_v16 = vld [vmem:[#allocation8 + $0x1c4] ss:$8 sps:$4 sm:$0xff]  }
 0x15f   :  { %1216 = vmatpush1.bf16.msra.mxu1 %v1880_v47  ;;  %1719 = vmatpush3.bf16.msra.mxu0 %v1976_v17  ;;  %v1961_v17 = vld [vmem:[#allocation8 + $0x1c0] ss:$8 sps:$4 sm:$0xff]  }
 0x160   :  { %1217 = vmatprep.subr.bf16.mxu1 %v1885_v48  ;;  %1720 = vmatprep.subr.bf16.mxu0 %v1977_v18  ;;  %v791_v18 = vcombine.high %v2278_v30, %v2278_v30  ;;  %v1984_v30 = vld [vmem:[#allocation10 + $0x28] sm:$0xff]  }
 0x163   :  { %1218 = vmatpush1.bf16.msra.mxu1 %v1883_v49  ;;  %1721 = vmatpush3.bf16.msra.mxu0 %v1978_v19  ;;  %v1966_v19 = vld [vmem:[#allocation8 + $0x1d4] ss:$8 sps:$4 sm:$0xff]  }
 0x164   :  { %1219 = vmatprep.subr.bf16.mxu1 %v1888_v50  ;;  %1722 = vmatprep.subr.bf16.mxu0 %v1979_v20  ;;  %v1964_v20 = vld [vmem:[#allocation8 + $0x1d0] ss:$8 sps:$4 sm:$0xff]  }
 0x167   :  { %1220 = vmatpush1.bf16.msra.mxu1 %v1886_v51  ;;  %1723 = vmatpush3.bf16.msra.mxu0 %v1980_v21  ;;  %v808_v21 = vpack.i.b16 %v791_v18, %v791_v18 }
 0x168   :  { %1221 = vmatprep.subr.bf16.mxu1 %v1891_v52  ;;  %1724 = vmatprep.subr.bf16.mxu0 %v1981_v22  ;;  %v1969_v22 = vld [vmem:[#allocation8 + $0x1e4] ss:$8 sps:$4 sm:$0xff]  }
 0x16b   :  { %1222 = vmatpush1.bf16.msra.mxu1 %v1889_v53  ;;  %1725 = vmatpush3.bf16.msra.mxu0 %v1982_v23  ;;  %v1967_v23 = vld [vmem:[#allocation8 + $0x1e0] ss:$8 sps:$4 sm:$0xff]  }
 0x16c   :  { %1223 = vmatprep.subr.bf16.mxu1 %v1894_v54  ;;  %1726 = vmatprep.subr.bf16.mxu0 %v1983_v24  ;;  %v1925_v54 = vld [vmem:[#allocation8 + $0x100] ss:$8 sps:$4 sm:$0xff]   ;;  %v813_v24 = vrot.slane %v808_v21, %v2267_v31 }
 0x16f   :  { %1224 = vmatpush1.bf16.msra.mxu1 %v1892_v55  ;;  %1727 = vmatpush3.bf16.msra.mxu0 %v1984_v30 }
 0x170   :  { %1225 = vmatprep.subr.bf16.mxu1 %v1897_v56  ;;  %v1930_v56 = vld [vmem:[#allocation8 + $0x114] ss:$8 sps:$4 sm:$0xff]   ;;  %1728 = vmatprep.subr.bf16.mxu0 %v1985_v32 }
 0x173   :  { %1226 = vmatpush1.bf16.msra.mxu1 %v1895_v57  ;;  %1729 = vmatpush3.bf16.msra.mxu0 %v1986_v33 }
 0x174   :  { %1227 = vmatprep.subr.bf16.mxu1 %v1900_v58  ;;  %v1928_v58 = vld [vmem:[#allocation8 + $0x110] ss:$8 sps:$4 sm:$0xff]   ;;  %1730 = vmatprep.subr.bf16.mxu0 %v1987_v34 }
 0x177   :  { %1228 = vmatpush1.bf16.msra.mxu1 %v1898_v59  ;;  %v1933_v59 = vld [vmem:[#allocation8 + $0x124] ss:$8 sps:$4 sm:$0xff]  }
 0x178   :  { %1229 = vmatprep.subr.bf16.mxu1 %v1903_v60  ;;  %v1931_v60 = vld [vmem:[#allocation8 + $0x120] ss:$8 sps:$4 sm:$0xff]  }
 0x17b   :  { %1230 = vmatpush1.bf16.msra.mxu1 %v1901_v61  ;;  %v1936_v61 = vld [vmem:[#allocation8 + $0x134] ss:$8 sps:$4 sm:$0xff]  }
 0x17c   :  { %1231 = vmatprep.subr.bf16.mxu1 %v1906_v62  ;;  %v1934_v62 = vld [vmem:[#allocation8 + $0x130] ss:$8 sps:$4 sm:$0xff]  }
 0x17f   :  { %1232 = vmatpush1.bf16.msra.mxu1 %v1904_v63  ;;  %v1939_v63 = vld [vmem:[#allocation8 + $0x144] ss:$8 sps:$4 sm:$0xff]  }
 0x180   :  { %1233 = vmatprep.subr.bf16.mxu1 %v1909_v1  ;;  %v1937_v1 = vld [vmem:[#allocation8 + $0x140] ss:$8 sps:$4 sm:$0xff]  }
 0x183   :  { %1234 = vmatpush1.bf16.msra.mxu1 %v1907_v2  ;;  %v1942_v2 = vld [vmem:[#allocation8 + $0x154] ss:$8 sps:$4 sm:$0xff]  }
 0x184   :  { %1235 = vmatprep.subr.bf16.mxu1 %v1912_v3  ;;  %v1940_v3 = vld [vmem:[#allocation8 + $0x150] ss:$8 sps:$4 sm:$0xff]  }
 0x187   :  { %1236 = vmatpush1.bf16.msra.mxu1 %v1910_v4  ;;  %v1945_v4 = vld [vmem:[#allocation8 + $0x164] ss:$8 sps:$4 sm:$0xff]  }
 0x188   :  { %1237 = vmatprep.subr.bf16.mxu1 %v1915_v5  ;;  %v1943_v5 = vld [vmem:[#allocation8 + $0x160] ss:$8 sps:$4 sm:$0xff]  }
 0x18b   :  { %1238 = vmatpush1.bf16.msra.mxu1 %v1913_v6  ;;  %v1948_v6 = vld [vmem:[#allocation8 + $0x174] ss:$8 sps:$4 sm:$0xff]  }
 0x18c   :  { %1239 = vmatprep.subr.bf16.mxu1 %v1918_v7  ;;  %v1946_v7 = vld [vmem:[#allocation8 + $0x170] ss:$8 sps:$4 sm:$0xff]  }
 0x18f   :  { %1240 = vmatpush1.bf16.msra.mxu1 %v1916_v8  ;;  %v1951_v8 = vld [vmem:[#allocation8 + $0x184] ss:$8 sps:$4 sm:$0xff]  }
 0x190   :  { %1241 = vmatprep.subr.bf16.mxu1 %v1921_v9  ;;  %v1949_v9 = vld [vmem:[#allocation8 + $0x180] ss:$8 sps:$4 sm:$0xff]  }
 0x193   :  { %1242 = vmatpush1.bf16.msra.mxu1 %v1919_v10  ;;  %v1954_v10 = vld [vmem:[#allocation8 + $0x194] ss:$8 sps:$4 sm:$0xff]  }
 0x194   :  { %1243 = vmatprep.subr.bf16.mxu1 %v1924_v11  ;;  %v1952_v11 = vld [vmem:[#allocation8 + $0x190] ss:$8 sps:$4 sm:$0xff]  }
 0x197   :  { %1244 = vmatpush1.bf16.msra.mxu1 %v1922_v12  ;;  %v1957_v12 = vld [vmem:[#allocation8 + $0x1a4] ss:$8 sps:$4 sm:$0xff]  }
 0x198   :  { %1256 = vmatprep.subr.bf16.mxu1 %v1927_v13  ;;  %v1955_v13 = vld [vmem:[#allocation8 + $0x1a0] ss:$8 sps:$4 sm:$0xff]  }
 0x22d   :  { %v711_v35 = vpop.f32.mrb[0].mxu1  ;;  %v2282_v36 = vpop.f32.mrb[4].mxu0 }
 0x22e   :  { %v713_v37 = vpop.f32.mrb[1].mxu1  ;;  %v756_v38 = vpop.f32.mrb[5].mxu0 }
 0x22f   :  { %v715_v40 = vpop.f32.mrb[2].mxu1  ;;  %v2285_v41 = vpop.f32.mrb[6].mxu0 }
 0x230   :  { %v763_v44 = vpack.c.bf16 %v715_v40, %v711_v35  ;;  %v765_v45 = vpack.c.bf16 %v2285_v41, %v2282_v36  ;;  %v717_v46 = vpop.f32.mrb[3].mxu1  ;;  %v760_v47 = vpop.f32.mrb[7].mxu0  ;;  %v1988_v35 = vld [vmem:[#allocation10 + $0x38] sm:$0xff]  }
 0x231   :  { %v764_v48 = vpack.c.bf16 %v717_v46, %v713_v37  ;;  %v766_v49 = vpack.c.bf16 %v760_v47, %v756_v38  ;;  %1731 = vmatpush3.bf16.msra.mxu0 %v1988_v35  ;;  %v1697_v36 = vld.sshfl [vmem:[%s2335_s6] sm:$0x11 pattern:$0x75316420] }
 0x232   :  { %v821_v50 = vadd.bf16 %v799_v39, %v763_v44  ;;  %v823_v28 = vadd.bf16 %v813_v24, %v765_v45  ;;  %v1310_v37 = vcombine.high %v1697_v36, %v1697_v36  ;;  %v1317_v38 = vrot.slane %v1697_v36, %v2263_v26 }
 0x233   :  { %v822_v51 = vadd.bf16 %v806_v42, %v764_v48  ;;  %v824_v52 = vadd.bf16 %v820_v43, %v766_v49 }
 0x234   :  { %v825_v55 = vmax.bf16 %v2140_v0, %v821_v50  ;;  %v827_v29 = vmax.bf16 %v2140_v0, %v823_v28  ;;  %v1324_v39 = vrot.slane %v1310_v37, %v2263_v26  ;;  %v1326_v40 = vpack.i.b16 %v1317_v38, %v1317_v38  ;;  %v1513_v26 = vld [vmem:[%s2337_s8] sm:$0x1] }
 0x235   :  { %v826_v53 = vmax.bf16 %v2140_v0, %v822_v51  ;;  %v828_v57 = vmax.bf16 %v2140_v0, %v824_v52 }
 0x236   :  { %v1333_v41 = vpack.i.b16 %v1324_v39, %v1324_v39  ;;  %v1331_v44 = vrot.slane %v1326_v40, %v2267_v31 }
 0x237   :  { %1245 = vmatprep.mubr.bf16.mxu1 %v826_v53 }
 0x238   :  { %1246 = vmatmul.mubr.bf16.vlgmr.msra.gmra.mrb[4].mxu1 %v825_v55  ;;  %v1338_v46 = vrot.slane %v1333_v41, %v2267_v31  ;;  %v1515_v55 = vpack.i.b16 %v1513_v26, %v1513_v26 }
 0x239   :  { %1257 = vmatpush1.bf16.msra.mxu1 %v1925_v54  ;;  %1288 = vmatprep.mubr.bf16.mxu1 %v828_v57 }
 0x23a   :  { %1258 = vmatprep.subr.bf16.mxu1 %v1930_v56 }
 0x23d   :  { %1259 = vmatpush1.bf16.msra.mxu1 %v1928_v58 }
 0x23e   :  { %1260 = vmatprep.subr.bf16.mxu1 %v1933_v59 }
 0x241   :  { %1261 = vmatpush1.bf16.msra.mxu1 %v1931_v60 }
 0x242   :  { %1262 = vmatprep.subr.bf16.mxu1 %v1936_v61  ;;  %v1520_v61 = vrot.slane %v1515_v55, %v2267_v31 }
 0x245   :  { %1263 = vmatpush1.bf16.msra.mxu1 %v1934_v62 }
 0x246   :  { %1264 = vmatprep.subr.bf16.mxu1 %v1939_v63 }
 0x249   :  { %1265 = vmatpush1.bf16.msra.mxu1 %v1937_v1 }
 0x24a   :  { %1266 = vmatprep.subr.bf16.mxu1 %v1942_v2 }
 0x24d   :  { %1267 = vmatpush1.bf16.msra.mxu1 %v1940_v3 }
 0x24e   :  { %1268 = vmatprep.subr.bf16.mxu1 %v1945_v4 }
 0x251   :  { %1269 = vmatpush1.bf16.msra.mxu1 %v1943_v5 }
 0x252   :  { %1270 = vmatprep.subr.bf16.mxu1 %v1948_v6 }
 0x255   :  { %1271 = vmatpush1.bf16.msra.mxu1 %v1946_v7 }
 0x256   :  { %1272 = vmatprep.subr.bf16.mxu1 %v1951_v8 }
 0x259   :  { %1273 = vmatpush1.bf16.msra.mxu1 %v1949_v9 }
 0x25a   :  { %1274 = vmatprep.subr.bf16.mxu1 %v1954_v10 }
 0x25d   :  { %1275 = vmatpush1.bf16.msra.mxu1 %v1952_v11 }
 0x25e   :  { %1276 = vmatprep.subr.bf16.mxu1 %v1957_v12 }
 0x261   :  { %1277 = vmatpush1.bf16.msra.mxu1 %v1955_v13 }
 0x262   :  { %1278 = vmatprep.subr.bf16.mxu1 %v1960_v14 }
 0x265   :  { %1279 = vmatpush1.bf16.msra.mxu1 %v1958_v15 }
 0x266   :  { %1280 = vmatprep.subr.bf16.mxu1 %v1963_v16 }
 0x269   :  { %1281 = vmatpush1.bf16.msra.mxu1 %v1961_v17 }
 0x26a   :  { %1282 = vmatprep.subr.bf16.mxu1 %v1966_v19 }
 0x26d   :  { %1283 = vmatpush1.bf16.msra.mxu1 %v1964_v20 }
 0x26e   :  { %1284 = vmatprep.subr.bf16.mxu1 %v1969_v22 }
 0x271   :  { %1285 = vmatpush1.bf16.msra.mxu1 %v1967_v23 }
 0x272   :  { %1286 = vmatprep.subr.bf16.mxu1 %v1972_v25 }
 0x275   :  { %1287 = vmatpush1.bf16.msra.mxu1 %v1970_v27 }
 0x278   :  { %1289 = vmatmul.mubr.bf16.vlgmr.msra.gmra.mrb[4].mxu1 %v827_v29 }
 0x34b   :  { %v1290_v42 = vpop.f32.mrb[4].mxu1 }
 0x34c   :  { %v1292_v43 = vpop.f32.mrb[5].mxu1 }
 0x34d   :  { %v1294_v45 = vpop.f32.mrb[6].mxu1 }
 0x34e   :  { %v1299_v47 = vpack.c.bf16 %v1294_v45, %v1290_v42  ;;  %v1296_v48 = vpop.f32.mrb[7].mxu1 }
 0x34f   :  { %v1300_v49 = vpack.c.bf16 %v1296_v48, %v1292_v43 }
 0x350   :  { %v1339_v50 = vadd.bf16 %v1331_v44, %v1299_v47 }
 0x351   :  { %v1340_v51 = vadd.bf16 %v1338_v46, %v1300_v49 }
 0x352   :  { %v1341_v53 = vmax.bf16 %v2140_v0, %v1339_v50 }
 0x353   :  { %v1342_v52 = vmax.bf16 %v2140_v0, %v1340_v51 }
 0x355   :  { %1503 = vmatprep.mubr.bf16.mxu0 %v1342_v52 }
 0x356   :  { %1504 = vmatmul.mubr.bf16.vlgmr.msra.gmra.mrb[8].mxu0 %v1341_v53 }
 0x429   :  { %v1732_v54 = vpop.f32.mrb[8].mxu0 }
 0x42a   :  { %v1733_v56 = vpop.f32.mrb[9].mxu0 }
 0x42b   :  { %v1734_v57 = vadd.f32 %v1733_v56, %v1732_v54  ;;  %v1735_v58 = vpop.f32.mrb[10].mxu0 }
 0x42c   :  { %v1736_v59 = vpop.f32.mrb[11].mxu0 }
 0x42d   :  { %v1737_v60 = vadd.f32 %v1736_v59, %v1735_v58 }
 0x42f   :  { %v1512_v62 = vpack.c.bf16 %v1737_v60, %v1734_v57 }
 0x431   :  { %v1521_v63 = vadd.bf16 %v1520_v61, %v1512_v62 }
 0x433   :  { %v1714_v0 = vcombine.low %v1521_v63, %v1521_v63  ;;  %v1715_v1 = vcombine.high %v1521_v63, %v1521_v63 }
 0x435   :  { %1529 = vst [vmem:[#allocation11] sm:$0xf] %v1714_v0  ;;  %1530 = vst [vmem:[#allocation11 + $0x4] sm:$0xf] %v1715_v1 }
 0x436   :  { %2110 = shalt.err (!%p2107_p2)
}
 0x437   :  { %s2111_s26 = scalar_lea.hbm %s2338_s9, 128 }
 0x438   :  { %p2112_p3 = scmp.ne.s32.totalorder %s2338_s9, %s2111_s26  ;;  %p2115_p4 = scmp.lt.u32.totalorder %s2111_s26, %s2338_s9 }
 0x43a   :  { %p2117_p5 = pnand %p2115_p4, %p2112_p3 }
 0x43c   :  { %2120 = shalt.err (!%p2117_p5)
}
 0x43d   :  { %1542 = dma.vmem_to_hbm [thread:$0]  %s1537_s10, 128, %s2338_s9, [#allocation4], %s2134_s5, %s2134_s5, %s2135_s19  }
 0x43e   :  { %2127 = dma.done.wait [#allocation4], 128  }
 0x43f   :  { %2128 = vsyncadd [#allocation4], 4294967168 }
 0x440   :  { %1546 = vsyncpa [#allocation3], 1 }
 0x441   :  { %1547 = vsyncpa [#allocation6], 1 }
 0x442   :  { %1548 = vsyncpa [#allocation9], 1 }
 0x443   :  { %1549 = vsyncpa [#allocation4], 1 }

</bundles_post_ra>
